<compile_context>
chip_gen: v6e
topology: v6e:2x2x1
jax: 0.10.0
libtpu: 0.0.40
codegen_flags: <defaults>
</compile_context>

<pallas_src>
import numpy as np
import jax
import jax.numpy as jnp
from jax.experimental import pallas as pl
from jax.experimental.pallas import tpu as pltpu


def make_sinusoid_table(n_position: int, d_hid: int) -> jnp.ndarray:
    """Deterministic sinusoid positional encoding table, shape (n_position, d_hid)."""
    pos = np.arange(n_position, dtype=np.float64)[:, None]            # (P, 1)
    hid = np.arange(d_hid, dtype=np.int64)[None, :]                   # (1, D)
    angle = pos / np.power(10000.0, 2.0 * (hid // 2) / float(d_hid))  # (P, D)
    table = np.array(angle)
    table[:, 0::2] = np.sin(table[:, 0::2])
    table[:, 1::2] = np.cos(table[:, 1::2])
    return jnp.asarray(table, dtype=jnp.float32)


def _broadcast_add_kernel(x_ref, pos_ref, o_ref):
    # pos block has a leading dim of 1 and broadcasts over the batch/row axis.
    o_ref[...] = x_ref[...] + pos_ref[...]


def _physical_vmem_bytes() -> int:
    """Per-TensorCore VMEM capacity; conservative default if the query fails."""
    try:
        info = pltpu.get_tpu_info()
        vmem = getattr(info, "vmem_capacity_bytes", None)
        if vmem:
            return int(vmem)
    except Exception:
        pass
    return 64 << 20  # v7x-sized conservative default; always safe on v5e/v6e.


def _choose_lane_dense_tiles(n_rows, n_cols, itemsize, block_target_bytes):
    """Tiles for a lane-dense (n_rows, n_cols) array with n_cols % 128 == 0.

    Returns (block_rows, block_cols) obeying the TPU (8, 128) block constraint
    while keeping a single block ~<= block_target_bytes.
    """
    full_bytes = n_rows * n_cols * itemsize
    if full_bytes <= block_target_bytes:
        block_rows, block_cols = n_rows, n_cols
    elif n_rows >= 8:
        # Lane chunk sized so at least 8 rows (one sublane tile) fit the target.
        cols_for_8_rows = max(128, (block_target_bytes // (8 * itemsize) // 128) * 128)
        block_cols = min(n_cols, cols_for_8_rows)
        rows = block_target_bytes // (block_cols * itemsize)
        block_rows = min(n_rows, max(8, (rows // 8) * 8))
    else:
        # Tiny row count (small batch) with huge rows: keep all rows, chunk the
        # lane axis only. Replaces the old "min 8 rows" fallback that could
        # blow VMEM when a single row was many MiB.
        block_rows = n_rows
        cols = (block_target_bytes // (n_rows * itemsize) // 128) * 128
        block_cols = min(n_cols, max(128, cols))

    # Megacore (v7x has 2 TensorCores): for large arrays, never collapse to a
    # single grid step so the 'parallel' axes can shard across both cores.
    if (block_rows, block_cols) == (n_rows, n_cols) and full_bytes >= (2 << 20):
        if n_rows >= 16:
            half = -(-n_rows // 2)
            block_rows = ((half + 7) // 8) * 8
        elif n_cols >= 256:
            half = -(-n_cols // 2)
            block_cols = ((half + 127) // 128) * 128
    return block_rows, block_cols


def _forward_lane_dense(x, pos, block_target_bytes, phys_vmem):
    """x viewed as (B, S*D) lane-dense rows; pos as a single (1, S*D) row."""
    B, S, D = x.shape
    row = S * D
    itemsize = jnp.dtype(x.dtype).itemsize
    x2d = x.reshape(B, row)
    pos_row = pos.reshape(1, row)

    block_rows, block_cols = _choose_lane_dense_tiles(B, row, itemsize, block_target_bytes)
    grid = (pl.cdiv(B, block_rows), pl.cdiv(row, block_cols))

    # Full pipelined working set: double-buffered input + output + pos block.
    block_bytes = block_rows * block_cols * itemsize
    working = 4 * block_bytes + 2 * block_cols * itemsize
    vmem_limit = int(min(max(2 * working, 8 << 20), phys_vmem * 3 // 4))

    out2d = pl.pallas_call(
        _broadcast_add_kernel,
        out_shape=jax.ShapeDtypeStruct((B, row), x.dtype),
        grid_spec=pltpu.PrefetchScalarGridSpec(
            num_scalar_prefetch=0,
            grid=grid,
            in_specs=[
                pl.BlockSpec((block_rows, block_cols), lambda i, j: (i, j)),  # x chunk
                pl.BlockSpec((1, block_cols), lambda i, j: (0, j)),           # pos (row-invariant)
            ],
            out_specs=pl.BlockSpec((block_rows, block_cols), lambda i, j: (i, j)),
        ),
        input_output_aliases={0: 0},  # pure in-place add; saves an HBM buffer when x is donated
        compiler_params=pltpu.CompilerParams(
            dimension_semantics=("parallel", "parallel"),
            vmem_limit_bytes=vmem_limit,
        ),
    )(x2d, pos_row)
    return out2d.reshape(B, S, D)


def _forward_blocked_3d(x, pos, block_target_bytes, phys_vmem):
    """Fallback when S*D is not 128-aligned: keep (B, S, D) and tile B and S.

    The trailing D dim stays full-width; stores may use a masked tail vreg if
    D is not a multiple of 128, but results stay correct.
    """
    B, S, D = x.shape
    itemsize = jnp.dtype(x.dtype).itemsize
    pos3 = pos.reshape(1, S, D)

    row_bytes = D * itemsize
    if S * row_bytes <= block_target_bytes or S <= 8:
        ts = S
    else:
        ts = min(S, max(8, ((block_target_bytes // row_bytes) // 8) * 8))
    tb = min(B, max(1, block_target_bytes // max(1, ts * row_bytes)))
    grid = (pl.cdiv(B, tb), pl.cdiv(S, ts))

    block_bytes = tb * ts * row_bytes
    working = 4 * block_bytes + 2 * ts * row_bytes
    vmem_limit = int(min(max(2 * working, 8 << 20), phys_vmem * 3 // 4))

    return pl.pallas_call(
        _broadcast_add_kernel,
        out_shape=jax.ShapeDtypeStruct((B, S, D), x.dtype),
        grid_spec=pltpu.PrefetchScalarGridSpec(
            num_scalar_prefetch=0,
            grid=grid,
            in_specs=[
                pl.BlockSpec((tb, ts, D), lambda i, j: (i, j, 0)),   # x block
                pl.BlockSpec((1, ts, D), lambda i, j: (0, j, 0)),    # pos (batch-invariant)
            ],
            out_specs=pl.BlockSpec((tb, ts, D), lambda i, j: (i, j, 0)),
        ),
        input_output_aliases={0: 0},
        compiler_params=pltpu.CompilerParams(
            dimension_semantics=("parallel", "parallel"),
            vmem_limit_bytes=vmem_limit,
        ),
    )(x, pos3)


def positional_encoding_forward(
    x: jnp.ndarray,
    pos_table: jnp.ndarray,
    *,
    min_pallas_bytes: int = 0,
    block_target_bytes: int | None = None,
) -> jnp.ndarray:
    """x: (B, S, D); pos_table: (n_position, D). Returns x + pos_table[:S] (broadcast over B)."""
    B, S, D = x.shape
    P, Dt = pos_table.shape
    assert D == Dt, f"hidden dim mismatch: x has {D}, pos_table has {Dt}"
    assert S <= P, f"sequence length {S} exceeds positional table size {P}"

    # Match PyTorch type promotion (half + float32 table -> float32 output).
    out_dtype = jnp.promote_types(x.dtype, pos_table.dtype)
    x = x.astype(out_dtype)
    pos = pos_table[:S, :].astype(out_dtype)

    itemsize = jnp.dtype(out_dtype).itemsize
    total_bytes = B * S * D * itemsize
    if total_bytes < min_pallas_bytes:
        # Tiny inputs: launch/DMA-setup overhead dominates; let XLA fuse the add.
        return x + pos[None, :, :]

    phys_vmem = _physical_vmem_bytes()
    if block_target_bytes is None:
        # Budget the full pipelined working set (2x in + 2x out + pos block)
        # against VMEM: ~3/8 of physical (128 MiB v5e/v6e, 64 MiB per-TC v7x),
        # capped at 32 MiB, then one block gets ~1/6 of that budget.
        budget = min(phys_vmem * 3 // 8, 32 << 20)
        block_target_bytes = max(256 << 10, budget // 6)

    if (S * D) % 128 == 0:
        return _forward_lane_dense(x, pos, block_target_bytes, phys_vmem)
    return _forward_blocked_3d(x, pos, block_target_bytes, phys_vmem)


if __name__ == "__main__":
    # Module config: d_hid=32, n_position=200. Input: batch=2, seq=8, hidden=32.
    d_hid = 32
    n_position = 200
    B, S = 2, 8

    pos_table = make_sinusoid_table(n_position, d_hid)
    key = jax.random.PRNGKey(0)
    x = jax.random.normal(key, (B, S, d_hid), dtype=jnp.float32)

    out = jax.block_until_ready(positional_encoding_forward(x, pos_table))
    ref = x + pos_table[None, :S, :]
    assert out.shape == (B, S, d_hid)
    assert jnp.allclose(out, ref, atol=1e-6), "mismatch vs reference (module shape)"

    # Exercise the 128-aligned lane-dense path at a modest larger shape.
    x2 = jax.random.normal(jax.random.PRNGKey(1), (4, 64, 128), dtype=jnp.float32)
    pos2 = make_sinusoid_table(128, 128)
    out2 = jax.block_until_ready(positional_encoding_forward(x2, pos2))
    assert jnp.allclose(out2, x2 + pos2[None, :64, :], atol=1e-6), "mismatch (lane-dense path)"

    # Exercise the non-128-aligned fallback path (S*D = 120).
    x3 = jax.random.normal(jax.random.PRNGKey(2), (2, 5, 24), dtype=jnp.float32)
    pos3 = make_sinusoid_table(16, 24)
    out3 = jax.block_until_ready(positional_encoding_forward(x3, pos3))
    assert jnp.allclose(out3, x3 + pos3[None, :5, :], atol=1e-6), "mismatch (fallback path)"

    print("KERNEL_OK")
</pallas_src>

<mosaic_0001>
module attributes {stable_mosaic.version = 11 : i64} {
  func.func @_broadcast_add_kernel(%arg0: i32, %arg1: i32, %arg2: memref<2x256xf32, #tpu.memory_space<vmem>>, %arg3: memref<1x256xf32, #tpu.memory_space<vmem>>, %arg4: memref<2x256xf32, #tpu.memory_space<vmem>>) attributes {dimension_semantics = [#tpu.dimension_semantics<parallel>, #tpu.dimension_semantics<parallel>], iteration_bounds = array<i64: 1, 1>, scalar_prefetch = 0 : i64, scratch_operands = 0 : i64, tpu.core_type = #tpu.core_type<tc>, window_params = [{transform_indices = @transform_0, window_bounds = array<i64: 2, 256>}, {transform_indices = @transform_1, window_bounds = array<i64: 1, 256>}, {transform_indices = @transform_2, window_bounds = array<i64: 2, 256>}]} {
    %c0 = arith.constant 0 : index
    %c0_0 = arith.constant 0 : index
    %0 = vector.load %arg2[%c0, %c0_0] : memref<2x256xf32, #tpu.memory_space<vmem>>, vector<2x256xf32>
    %c0_1 = arith.constant 0 : index
    %c0_2 = arith.constant 0 : index
    %1 = vector.load %arg3[%c0_1, %c0_2] : memref<1x256xf32, #tpu.memory_space<vmem>>, vector<1x256xf32>
    %2 = vector.broadcast %1 : vector<1x256xf32> to vector<2x256xf32>
    %3 = arith.addf %0, %2 : vector<2x256xf32>
    %c0_3 = arith.constant 0 : index
    %c0_4 = arith.constant 0 : index
    %4 = vector.load %arg4[%c0_3, %c0_4] : memref<2x256xf32, #tpu.memory_space<vmem>>, vector<2x256xf32>
    tpu.vector_store %arg4[%c0_3, %c0_4], %3 {strides = array<i32>} : memref<2x256xf32, #tpu.memory_space<vmem>>, vector<2x256xf32>,
    return
  }
  func.func @transform_0(%arg0: i32, %arg1: i32) -> (i32, i32) {
    %c0_i32 = arith.constant 0 : i32
    return %arg0, %arg1 : i32, i32
  }
  func.func @transform_1(%arg0: i32, %arg1: i32) -> (i32, i32) {
    %c0_i32 = arith.constant 0 : i32
    %c0_i32_0 = arith.constant 0 : i32
    return %c0_i32, %arg1 : i32, i32
  }
  func.func @transform_2(%arg0: i32, %arg1: i32) -> (i32, i32) {
    %c0_i32 = arith.constant 0 : i32
    return %arg0, %arg1 : i32, i32
  }
}

</mosaic_0001>

<bundles_post_ra>
// kernel: tpu_custom_call.1
= control target key start
LH: loop header
LB: loop body
LE: loop exit
PB: predicated region body
PF: predicated region fallthrough
CT: control target
= control target key end

     0   :  { %7 = vsyncpa [#allocation3], 0  ;;  %s135_s0 = inlined_call_operand.hbm [shape: f32[2,256], index: 0, kind: input, shape index: {}, may-alias: {0,2}]   ;;  %s136_s1 = inlined_call_operand.vmem [shape: f32[1,256], index: 1, kind: input, shape index: {}]   ;;  %s137_s2 = inlined_call_operand.hbm [shape: f32[2,256], index: 2, kind: output, shape index: {}, may-alias: {0,2}]  }
   0x1   :  { %8 = vsyncpa [#allocation4], 0  ;;  %s108_s9 = smov [#allocation2]  }
   0x2   :  { %s15_s10 = sshll.u32 %s108_s9, 4  ;;  %s16_s10 = int_to_ptr.vmem [resolvable:$true] %s15_s10 }
   0x3   :  { %s72_s11 = scalar_lea.vmem %s16_s10, 64  ;;  %p77_p1 = scmp.lt.s32.totalorder %s16_s10, %s16_s10 }
   0x4   :  { %p73_p0 = scmp.ne.s32.totalorder %s16_s10, %s72_s11  ;;  %p78_p2 = scmp.lt.s32.totalorder %s72_s11, %s72_s11 }
   0x6   :  { %p79_p3 = por %p78_p2, %p77_p1 }
   0x8   :  { %p80_p4 = pnand %p79_p3, %p73_p0 }
   0xa   :  { %83 = shalt.err (!%p80_p4)
}
   0xb   :  { %18 = dma.hbm_to_vmem [thread:$0]  %s135_s0, 64, %s16_s10, [#allocation3]  }
   0xc   :  { %104 = dma.done.wait [#allocation3], 64  }
   0xd   :  { %105 = vsyncadd [#allocation3], 4294967232  ;;  %v27_v0 = vlaneseq  ;;  %v109_v1 = vmov 1983009808   ;;  %v25_v7 = vld [vmem:[%s136_s1] sm:$0x3] }
   0xe   :  { %v37_v2 = vunpack.c.l.s4 %v109_v1  ;;  %v24_v12 = vld [vmem:[#allocation2] sm:$0xf]  ;;  %s110_s16 = smov [#allocation5]  }
   0xf   :  { %v28_v3 = vshrl.u32 %v27_v0, 7  ;;  %s52_s0 = sshll.u32 %s110_s16, 4  ;;  %s53_s0 = int_to_ptr.vmem [resolvable:$true] %s52_s0 }
  0x10   :  { %v38_v6 = vunpack.c.0.s8 %v37_v2  ;;  %s84_s17 = scalar_lea.vmem %s53_s0, 64  ;;  %p89_p6 = scmp.lt.s32.totalorder %s53_s0, %s53_s0 }
  0x11   :  { %v29_v4 = vsub.s32 0, %v28_v3  ;;  %v33_v5 = vsub.s32 1, %v28_v3  ;;  %p85_p5 = scmp.ne.s32.totalorder %s53_s0, %s84_s17  ;;  %p90_p7 = scmp.lt.s32.totalorder %s84_s17, %s84_s17 }
  0x12   :  { %v41_v10 = vsub.s32 %v38_v6, %v28_v3 }
  0x13   :  { %v30_v8 = vrot.slane %v25_v7, %v29_v4  ;;  %v34_v9 = vrot.slane %v25_v7, %v33_v5  ;;  %p91_p8 = por %p90_p7, %p89_p6 }
  0x15   :  { %v35_v11 = vcombine.low %v30_v8, %v34_v9  ;;  %p92_p9 = pnand %p91_p8, %p85_p5 }
  0x17   :  { %v42_v13 = vrot.slane %v35_v11, %v41_v10 }
  0x19   :  { %v44_v14 = vadd.f32 %v42_v13, %v24_v12 }
  0x1b   :  { %45 = vst [vmem:[#allocation5] sm:$0xf] %v44_v14 }
  0x1c   :  { %95 = shalt.err (!%p92_p9)
}
  0x1d   :  { %55 = dma.vmem_to_hbm [thread:$0]  %s53_s0, 64, %s137_s2, [#allocation4]  }
  0x1e   :  { %106 = dma.done.wait [#allocation4], 64  }
  0x1f   :  { %107 = vsyncadd [#allocation4], 4294967232 }
  0x20   :  { %59 = vsyncpa [#allocation3], 1 }
  0x21   :  { %60 = vsyncpa [#allocation4], 1 }

</bundles_post_ra>
